<compile_context>
chip_gen: v5e
topology: v5e:2x2
jax: 0.10.0
libtpu: 0.0.40
codegen_flags: <defaults>
</compile_context>

<pallas_src>
import functools

import jax
import jax.numpy as jnp
from jax import lax
from jax.experimental import pallas as pl
from jax.experimental.pallas import tpu as pltpu

_LANE = 128
_SUBLANE = {1: 32, 2: 16, 4: 8, 8: 8}  # packed sublane tile per itemsize


def _round_up(v, m):
    return (v + m - 1) // m * m


# ----------------------------- kernels --------------------------------------


def _proj_kernel_resident(x_ref, w_ref, o_ref, *, norm, exact_prenorm):
    """Whole (D_in_p, D_out_p) weight is VMEM-resident; one dot per row tile."""
    x = x_ref[...]
    if norm and exact_prenorm:
        # Bit-near-exact torch order: normalize x before the projection.
        x32 = x.astype(jnp.float32)
        inv = lax.rsqrt(jnp.sum(x32 * x32, axis=-1, keepdims=True))
        x = (x32 * inv).astype(x_ref.dtype)
    y = jnp.dot(x, w_ref[...], preferred_element_type=jnp.float32)
    if norm:
        # Post-projection L2 norm: rsqrt-multiply (EUP slot) in f32.
        y = y * lax.rsqrt(jnp.sum(y * y, axis=-1, keepdims=True))
    o_ref[...] = y.astype(o_ref.dtype)


def _proj_kernel_ktiled(x_ref, w_ref, o_ref, acc_ref, *, norm):
    """Weight streamed in (TK, D_out_p) blocks; f32 accumulator kept in VMEM."""
    k = pl.program_id(1)

    @pl.when(k == 0)
    def _():
        acc_ref[...] = jnp.zeros_like(acc_ref)

    acc_ref[...] += jnp.dot(x_ref[...], w_ref[...],
                            preferred_element_type=jnp.float32)

    @pl.when(k == pl.num_programs(1) - 1)
    def _():
        y = acc_ref[...]
        if norm:
            y = y * lax.rsqrt(jnp.sum(y * y, axis=-1, keepdims=True))
        o_ref[...] = y.astype(o_ref.dtype)


# ----------------------------- wrapper ---------------------------------------


def projection_layer(x, weight, *, apply_projection=True, norm=True,
                     tm=512, tk=None, exact_prenorm=False,
                     vmem_budget_bytes=40 << 20):
    """Pallas implementation of ProjectionLayer.forward.

    x:      (..., D_in)
    weight: (D_out, D_in)   -- torch nn.Linear(D_in, D_out, bias=False).weight
    """
    if not apply_projection:
        # projection=False => norm_modality=False and no projection: identity.
        return x

    orig_shape = x.shape
    d_in = int(orig_shape[-1])
    d_out, d_in_w = (int(s) for s in weight.shape)
    assert d_in_w == d_in, (weight.shape, d_in)

    m = 1
    for s in orig_shape[:-1]:
        m *= int(s)

    x_item = jnp.dtype(x.dtype).itemsize
    w_item = jnp.dtype(weight.dtype).itemsize
    out_item = x_item
    sub = _SUBLANE.get(x_item, 8)

    # --- tiny-problem fallback: padding + launch overhead not worth it -------
    if m < sub or max(d_in, d_out) < _LANE:
        xf = x
        if norm:
            xf = xf / jnp.linalg.norm(xf, axis=-1, keepdims=True)
        y = jnp.einsum("...i,oi->...o", xf, weight)
        if norm:
            y = y / jnp.linalg.norm(y, axis=-1, keepdims=True)
        return y.astype(x.dtype)

    # --- feature-dim padding (usually a no-op: D already multiple of 128) ----
    d_in_p = _round_up(d_in, _LANE)
    d_out_p = _round_up(d_out, _LANE)

    x2d = x.reshape(m, d_in)
    if d_in_p != d_in:
        # Zero pad: padded x columns hit zero weight rows -> no effect.
        x2d = jnp.pad(x2d, ((0, 0), (0, d_in_p - d_in)))

    # One-time wrapper transpose: kernel contracts row-major (no RHS relayout).
    w_t = weight.T
    if d_in_p != d_in or d_out_p != d_out:
        w_t = jnp.pad(w_t, ((0, d_in_p - d_in), (0, d_out_p - d_out)))

    # --- K (D_in) tiling: stream the weight if it is too big to sit in VMEM --
    if norm and exact_prenorm:
        tk_eff = d_in_p            # exact pre-norm needs the full row at once
    elif tk is not None:
        tk_eff = max(_LANE, min(_round_up(int(tk), _LANE), d_in_p))
    else:
        resident_w_bytes = 2 * d_in_p * d_out_p * w_item   # double-buffered
        if resident_w_bytes > (12 << 20):
            # Target ~4 MiB weight blocks (v7x: 64 MiB VMEM per TensorCore).
            tk_eff = max(_LANE,
                         ((4 << 20) // max(d_out_p * w_item, 1)) // _LANE * _LANE)
            tk_eff = min(tk_eff, d_in_p)
        else:
            tk_eff = d_in_p
    while d_in_p % tk_eff:         # d_in_p % 128 == 0, so this terminates
        tk_eff -= _LANE
    n_k = d_in_p // tk_eff

    # --- row tile: dtype-aware sublane rounding, megacore-friendly grid ------
    tm_eff = max(sub, min(_round_up(int(tm), sub), _round_up(m, sub)))
    if m > 4 * sub:
        # Keep >= ~4 row tiles so both v7x TensorCores stay busy.
        tm_eff = max(sub, min(tm_eff, _round_up(pl.cdiv(m, 4), sub)))

    # --- VMEM budget: shrink TM until the pipeline buffers fit ---------------
    try:
        phys_vmem = int(pltpu.get_tpu_info().vmem_capacity_bytes)
    except Exception:
        phys_vmem = 64 << 20
    budget = min(int(vmem_budget_bytes), int(phys_vmem * 0.7))

    def _vmem_need(tm_v):
        need = 2 * tm_v * tk_eff * x_item          # x tiles (double buffered)
        need += 2 * tk_eff * d_out_p * w_item       # weight tiles
        need += 2 * tm_v * d_out_p * out_item       # output tiles
        if n_k > 1:
            need += tm_v * d_out_p * 4              # f32 accumulator scratch
        return need

    while _vmem_need(tm_eff) > budget and tm_eff > sub:
        tm_eff = max(sub, _round_up(tm_eff // 2, sub))

    vmem_limit = int(min(_vmem_need(tm_eff) + _vmem_need(tm_eff) // 4 + (2 << 20),
                         int(phys_vmem * 0.9)))

    grid_m = pl.cdiv(m, tm_eff)   # no row pad: ragged last tile handled by Pallas

    cost = pl.CostEstimate(
        flops=int(2 * m * d_in_p * d_out_p),
        transcendentals=int(m * (2 if (norm and exact_prenorm) else 1)) if norm else 0,
        bytes_accessed=int(m * d_in_p * x_item
                           + d_in_p * d_out_p * w_item
                           + m * d_out_p * out_item),
    )

    if n_k == 1:
        kernel = functools.partial(_proj_kernel_resident, norm=norm,
                                   exact_prenorm=exact_prenorm)
        grid = (grid_m,)
        in_specs = [
            pl.BlockSpec((tm_eff, d_in_p), lambda i: (i, 0)),
            pl.BlockSpec((d_in_p, d_out_p), lambda i: (0, 0)),   # resident weight
        ]
        out_specs = pl.BlockSpec((tm_eff, d_out_p), lambda i: (i, 0))
        scratch_shapes = []
        dim_sem = ("parallel",)
    else:
        kernel = functools.partial(_proj_kernel_ktiled, norm=norm)
        grid = (grid_m, n_k)                                     # K innermost
        in_specs = [
            pl.BlockSpec((tm_eff, tk_eff), lambda i, k: (i, k)),
            pl.BlockSpec((tk_eff, d_out_p), lambda i, k: (k, 0)),
        ]
        out_specs = pl.BlockSpec((tm_eff, d_out_p), lambda i, k: (i, 0))
        scratch_shapes = [pltpu.VMEM((tm_eff, d_out_p), jnp.float32)]
        dim_sem = ("parallel", "arbitrary")

    out = pl.pallas_call(
        kernel,
        out_shape=jax.ShapeDtypeStruct((m, d_out_p), x.dtype),
        grid=grid,
        in_specs=in_specs,
        out_specs=out_specs,
        scratch_shapes=scratch_shapes,
        compiler_params=pltpu.CompilerParams(
            dimension_semantics=dim_sem,
            vmem_limit_bytes=vmem_limit),
        cost_estimate=cost,
    )(x2d, w_t)

    out = out[:, :d_out]
    return out.reshape(orig_shape[:-1] + (d_out,))


# ----------------------------- reference & test ------------------------------


def _reference(x, weight, *, norm=True):
    x = x.astype(jnp.float32)
    weight = weight.astype(jnp.float32)
    if norm:
        x = x / jnp.linalg.norm(x, axis=-1, keepdims=True)
    y = jnp.einsum("...i,oi->...o", x, weight, precision=lax.Precision.HIGHEST)
    if norm:
        y = y / jnp.linalg.norm(y, axis=-1, keepdims=True)
    return y


if __name__ == "__main__":
    key = jax.random.PRNGKey(0)
    kx, kw, kx2 = jax.random.split(key, 3)

    # Small shapes consistent with an MDCLIP projection head.
    batch, seq, d_in, d_out = 2, 8, 384, 256
    x = jax.random.normal(kx, (batch, seq, d_in), dtype=jnp.float32)
    weight = (jax.random.normal(kw, (d_out, d_in), dtype=jnp.float32)
              * (1.0 / d_in ** 0.5))

    def _check(got, want, tol, msg):
        got32 = jnp.asarray(got, jnp.float32)
        want32 = jnp.asarray(want, jnp.float32)
        assert got32.shape == want32.shape, (msg, got32.shape, want32.shape)
        err = float(jnp.max(jnp.abs(got32 - want32)))
        assert err < tol, (msg, err)

    # 1) Default path: projection + norm (pre-norm folded away algebraically).
    out = jax.block_until_ready(projection_layer(x, weight))
    _check(out, _reference(x, weight, norm=True), 5e-3, "norm=True fused")

    # 2) Torch-exact op order (in-kernel pre-norm).
    out_exact = jax.block_until_ready(
        projection_layer(x, weight, exact_prenorm=True))
    _check(out_exact, _reference(x, weight, norm=True), 5e-3, "exact_prenorm")

    # 3) norm=False: plain bias-free linear projection.
    out_nn = jax.block_until_ready(projection_layer(x, weight, norm=False))
    _check(out_nn, _reference(x, weight, norm=False), 2e-2, "norm=False")

    # 4) Ragged row count + forced K-tiled weight streaming (partial last tile).
    x2 = jax.random.normal(kx2, (3, 7, d_in), dtype=jnp.float32)
    out_kt = jax.block_until_ready(projection_layer(x2, weight, tm=8, tk=128))
    _check(out_kt, _reference(x2, weight, norm=True), 5e-3, "ktiled+ragged")

    # 5) bf16 activations/weight (16-row packed sublane tile).
    out_bf = jax.block_until_ready(
        projection_layer(x.astype(jnp.bfloat16), weight.astype(jnp.bfloat16)))
    _check(out_bf, _reference(x, weight, norm=True), 2e-2, "bf16")

    # 6) Tiny shapes -> plain-XLA fallback path.
    x_small = x[..., :32]
    w_small = weight[:16, :32]
    out_sm = jax.block_until_ready(projection_layer(x_small, w_small))
    _check(out_sm, _reference(x_small, w_small, norm=True), 1e-2, "tiny fallback")

    # 7) projection=False -> identity.
    out_id = projection_layer(x, weight, apply_projection=False)
    assert out_id.shape == x.shape and bool(jnp.all(out_id == x))

    print("KERNEL_OK")
</pallas_src>

<mosaic_0001>
module attributes {stable_mosaic.version = 11 : i64} {
  func.func @_proj_kernel_resident(%arg0: i32, %arg1: memref<16x384xf32, #tpu.memory_space<vmem>>, %arg2: memref<384x256xf32, #tpu.memory_space<vmem>>, %arg3: memref<16x256xf32, #tpu.memory_space<vmem>>) attributes {dimension_semantics = [#tpu.dimension_semantics<parallel>], iteration_bounds = array<i64: 1>, scalar_prefetch = 0 : i64, scratch_operands = 0 : i64, tpu.core_type = #tpu.core_type<tc>, window_params = [{transform_indices = @transform_0, window_bounds = array<i64: 16, 384>}, {pipeline_mode = #tpu.pipeline_mode<synchronous>, transform_indices = @transform_1, window_bounds = array<i64: 384, 256>}, {transform_indices = @transform_2, window_bounds = array<i64: 16, 256>}]} {
    %c0 = arith.constant 0 : index
    %c0_0 = arith.constant 0 : index
    %0 = vector.load %arg1[%c0, %c0_0] : memref<16x384xf32, #tpu.memory_space<vmem>>, vector<16x384xf32>
    %c0_1 = arith.constant 0 : index
    %c0_2 = arith.constant 0 : index
    %1 = vector.load %arg2[%c0_1, %c0_2] : memref<384x256xf32, #tpu.memory_space<vmem>>, vector<384x256xf32>
    %cst = arith.constant dense<0.000000e+00> : vector<16x256xf32>
    %2 = tpu.matmul %0, %1, %cst {dimension_numbers = #tpu.dot_dimension_numbers<[1], [0], [0], [1], [0, 0, 1, 1], [], []>} : vector<16x384xf32>, vector<384x256xf32>, vector<16x256xf32> -> vector<16x256xf32>
    %3 = arith.mulf %2, %2 : vector<16x256xf32>
    %cst_3 = arith.constant dense<0.000000e+00> : vector<16xf32>
    %4 = vector.multi_reduction <add>, %3, %cst_3 [1] : vector<16x256xf32> to vector<16xf32>
    %5 = vector.shape_cast %4 : vector<16xf32> to vector<16x1xf32>
    %6 = math.rsqrt %5 : vector<16x1xf32>
    %7 = vector.broadcast %6 : vector<16x1xf32> to vector<16x256xf32>
    %8 = arith.mulf %2, %7 : vector<16x256xf32>
    %c0_4 = arith.constant 0 : index
    %c0_5 = arith.constant 0 : index
    %9 = vector.load %arg3[%c0_4, %c0_5] : memref<16x256xf32, #tpu.memory_space<vmem>>, vector<16x256xf32>
    tpu.vector_store %arg3[%c0_4, %c0_5], %8 {strides = array<i32>} : memref<16x256xf32, #tpu.memory_space<vmem>>, vector<16x256xf32>,
    return
  }
  func.func @transform_0(%arg0: i32) -> (i32, i32) {
    %c0_i32 = arith.constant 0 : i32
    %c0_i32_0 = arith.constant 0 : i32
    return %arg0, %c0_i32 : i32, i32
  }
  func.func @transform_1(%arg0: i32) -> (i32, i32) {
    %c0_i32 = arith.constant 0 : i32
    %c0_i32_0 = arith.constant 0 : i32
    %c0_i32_1 = arith.constant 0 : i32
    return %c0_i32, %c0_i32_0 : i32, i32
  }
  func.func @transform_2(%arg0: i32) -> (i32, i32) {
    %c0_i32 = arith.constant 0 : i32
    %c0_i32_0 = arith.constant 0 : i32
    return %arg0, %c0_i32 : i32, i32
  }
}

</mosaic_0001>

<bundles_post_ra>
// kernel: tpu_custom_call.1
= control target key start
LH: loop header
LB: loop body
LE: loop exit
PB: predicated region body
PF: predicated region fallthrough
CT: control target
= control target key end

     0   :  { %7 = vsyncpa [#allocation3], 0  ;;  %s504_s0 = inlined_call_operand.hbm [shape: f32[16,384], index: 0, kind: input, shape index: {}]   ;;  %s505_s1 = inlined_call_operand.hbm [shape: f32[384,256], index: 1, kind: input, shape index: {}]   ;;  %s506_s2 = inlined_call_operand.hbm [shape: f32[16,256], index: 2, kind: output, shape index: {}]  }
   0x1   :  { %8 = vsyncpa [#allocation6], 0 }
   0x2   :  { %9 = vsyncpa [#allocation4], 0  ;;  %s14_s11 = sshll.u32 %s504_s0, 4  ;;  %s463_s12 = smov [#allocation2]   ;;  %s15_s11 = int_to_ptr.hbm [resolvable:$true] %s14_s11 }
   0x3   :  { %s16_s13 = sshll.u32 %s463_s12, 4  ;;  %s27_s16 = sshll.u32 %s505_s1, 4  ;;  %s17_s13 = int_to_ptr.vmem [resolvable:$true] %s16_s13  ;;  %s28_s16 = int_to_ptr.hbm [resolvable:$true] %s27_s16 }
   0x4   :  { %s464_s17 = smov 384   ;;  %s465_s18 = smov 24  }
   0x5   :  { %22 = dma.hbm_to_vmem [thread:$0]  %s15_s11, 768, %s17_s13, [#allocation3], %s464_s17, %s464_s17, %s465_s18  }
   0x6   :  { %s466_s19 = smov [#allocation5]   ;;  %s467_s21 = smov 256  }
   0x7   :  { %s29_s20 = sshll.u32 %s466_s19, 4  ;;  %s468_s22 = smov 16   ;;  %s30_s20 = int_to_ptr.vmem [resolvable:$true] %s29_s20 }
   0x8   :  { %35 = dma.hbm_to_vmem [thread:$0]  %s28_s16, 12288, %s30_s20, [#allocation6], %s467_s21, %s467_s21, %s468_s22  }
   0x9   :  { %457 = dma.done.wait [#allocation3], 768  }
   0xa   :  { %458 = vsyncadd [#allocation3], 4294966528 }
   0xb   :  { %459 = dma.done.wait [#allocation6], 12288  }
   0xc   :  { %460 = vsyncadd [#allocation6], 4294955008  ;;  %v80_v0 = vld [vmem:[#allocation5 + $0xf0] sm:$0xff]  ;;  %v78_v2 = vld [vmem:[#allocation5 + $0xe0] sm:$0xff]  ;;  %s469_s0 = smov [#allocation7]   ;;  %s328_s25 = sshll.u32 %s506_s2, 4  ;;  %s329_s25 = int_to_ptr.hbm [resolvable:$true] %s328_s25 }
   0xd   :  { %v144_v1 = vld [vmem:[#allocation5 + $0x2f0] sm:$0xff]  ;;  %146 = vmatpush.msra.mxu0 %v80_v0  ;;  %v142_v4 = vld [vmem:[#allocation5 + $0x2e0] sm:$0xff]  ;;  %v81_v5 = vld [vmem:[#allocation5 + $0xf8] sm:$0xff]  ;;  %s326_s1 = sshll.u32 %s469_s0, 4  ;;  %s327_s1 = int_to_ptr.vmem [resolvable:$true] %s326_s1 }
   0xe   :  { %192 = vmatpush.msra.mxu2 %v144_v1  ;;  %v112_v3 = vld [vmem:[#allocation5 + $0x1f0] sm:$0xff]  ;;  %215 = vmatpush.msra.mxu3 %v81_v5  ;;  %v110_v7 = vld [vmem:[#allocation5 + $0x1e0] sm:$0xff]  ;;  %v79_v9 = vld [vmem:[#allocation5 + $0xe8] sm:$0xff] }
   0xf   :  { %169 = vmatpush.msra.mxu1 %v112_v3  ;;  %v76_v6 = vld [vmem:[#allocation5 + $0xd0] sm:$0xff]  ;;  %147 = vmatpush.msra.mxu0 %v78_v2  ;;  %v74_v11 = vld [vmem:[#allocation5 + $0xc0] sm:$0xff]  ;;  %v77_v13 = vld [vmem:[#allocation5 + $0xd8] sm:$0xff] }
  0x10   :  { %v140_v8 = vld [vmem:[#allocation5 + $0x2d0] sm:$0xff]  ;;  %193 = vmatpush.msra.mxu2 %v142_v4  ;;  %216 = vmatpush.msra.mxu3 %v79_v9  ;;  %v138_v12 = vld [vmem:[#allocation5 + $0x2c0] sm:$0xff]  ;;  %v75_v15 = vld [vmem:[#allocation5 + $0xc8] sm:$0xff] }
  0x11   :  { %v108_v10 = vld [vmem:[#allocation5 + $0x1d0] sm:$0xff]  ;;  %170 = vmatpush.msra.mxu1 %v110_v7  ;;  %148 = vmatpush.msra.mxu0 %v76_v6  ;;  %v106_v14 = vld [vmem:[#allocation5 + $0x1c0] sm:$0xff]  ;;  %v73_v19 = vld [vmem:[#allocation5 + $0xb8] sm:$0xff] }
  0x12   :  { %194 = vmatpush.msra.mxu2 %v140_v8  ;;  %217 = vmatpush.msra.mxu3 %v77_v13  ;;  %v72_v16 = vld [vmem:[#allocation5 + $0xb0] sm:$0xff]  ;;  %v70_v20 = vld [vmem:[#allocation5 + $0xa0] sm:$0xff]  ;;  %v71_v23 = vld [vmem:[#allocation5 + $0xa8] sm:$0xff] }
  0x13   :  { %171 = vmatpush.msra.mxu1 %v108_v10  ;;  %v136_v17 = vld [vmem:[#allocation5 + $0x2b0] sm:$0xff]  ;;  %149 = vmatpush.msra.mxu0 %v74_v11  ;;  %v134_v21 = vld [vmem:[#allocation5 + $0x2a0] sm:$0xff]  ;;  %v69_v27 = vld [vmem:[#allocation5 + $0x98] sm:$0xff] }
  0x14   :  { %195 = vmatpush.msra.mxu2 %v138_v12  ;;  %v104_v18 = vld [vmem:[#allocation5 + $0x1b0] sm:$0xff]  ;;  %218 = vmatpush.msra.mxu3 %v75_v15  ;;  %v102_v22 = vld [vmem:[#allocation5 + $0x1a0] sm:$0xff]  ;;  %v67_v31 = vld [vmem:[#allocation5 + $0x88] sm:$0xff] }
  0x15   :  { %172 = vmatpush.msra.mxu1 %v106_v14  ;;  %150 = vmatpush.msra.mxu0 %v72_v16  ;;  %v68_v24 = vld [vmem:[#allocation5 + $0x90] sm:$0xff]  ;;  %v66_v28 = vld [vmem:[#allocation5 + $0x80] sm:$0xff]  ;;  %v65_v35 = vld [vmem:[#allocation5 + $0x78] sm:$0xff] }
  0x16   :  { %196 = vmatpush.msra.mxu2 %v136_v17  ;;  %219 = vmatpush.msra.mxu3 %v73_v19  ;;  %v132_v25 = vld [vmem:[#allocation5 + $0x290] sm:$0xff]  ;;  %v130_v29 = vld [vmem:[#allocation5 + $0x280] sm:$0xff]  ;;  %v63_v39 = vld [vmem:[#allocation5 + $0x68] sm:$0xff] }
  0x17   :  { %173 = vmatpush.msra.mxu1 %v104_v18  ;;  %151 = vmatpush.msra.mxu0 %v70_v20  ;;  %v100_v26 = vld [vmem:[#allocation5 + $0x190] sm:$0xff]  ;;  %v98_v30 = vld [vmem:[#allocation5 + $0x180] sm:$0xff]  ;;  %v61_v43 = vld [vmem:[#allocation5 + $0x58] sm:$0xff] }
  0x18   :  { %197 = vmatpush.msra.mxu2 %v134_v21  ;;  %220 = vmatpush.msra.mxu3 %v71_v23  ;;  %v64_v32 = vld [vmem:[#allocation5 + $0x70] sm:$0xff]  ;;  %v62_v36 = vld [vmem:[#allocation5 + $0x60] sm:$0xff]  ;;  %v59_v47 = vld [vmem:[#allocation5 + $0x48] sm:$0xff] }
  0x19   :  { %174 = vmatpush.msra.mxu1 %v102_v22  ;;  %152 = vmatpush.msra.mxu0 %v68_v24  ;;  %v128_v33 = vld [vmem:[#allocation5 + $0x270] sm:$0xff]  ;;  %v126_v37 = vld [vmem:[#allocation5 + $0x260] sm:$0xff]  ;;  %v57_v51 = vld [vmem:[#allocation5 + $0x38] sm:$0xff] }
  0x1a   :  { %198 = vmatpush.msra.mxu2 %v132_v25  ;;  %221 = vmatpush.msra.mxu3 %v69_v27  ;;  %v96_v34 = vld [vmem:[#allocation5 + $0x170] sm:$0xff]  ;;  %v94_v38 = vld [vmem:[#allocation5 + $0x160] sm:$0xff]  ;;  %v55_v55 = vld [vmem:[#allocation5 + $0x28] sm:$0xff] }
  0x1b   :  { %175 = vmatpush.msra.mxu1 %v100_v26  ;;  %153 = vmatpush.msra.mxu0 %v66_v28  ;;  %v60_v40 = vld [vmem:[#allocation5 + $0x50] sm:$0xff]  ;;  %v58_v44 = vld [vmem:[#allocation5 + $0x40] sm:$0xff]  ;;  %v53_v59 = vld [vmem:[#allocation5 + $0x18] sm:$0xff] }
  0x1c   :  { %199 = vmatpush.msra.mxu2 %v130_v29  ;;  %222 = vmatpush.msra.mxu3 %v67_v31  ;;  %v124_v41 = vld [vmem:[#allocation5 + $0x250] sm:$0xff]  ;;  %v122_v45 = vld [vmem:[#allocation5 + $0x240] sm:$0xff]  ;;  %v113_v62 = vld [vmem:[#allocation5 + $0x1f8] sm:$0xff] }
  0x1d   :  { %176 = vmatpush.msra.mxu1 %v98_v30  ;;  %154 = vmatpush.msra.mxu0 %v64_v32  ;;  %v92_v42 = vld [vmem:[#allocation5 + $0x150] sm:$0xff]  ;;  %v90_v46 = vld [vmem:[#allocation5 + $0x140] sm:$0xff]  ;;  %v51_v0 = vld [vmem:[#allocation5 + $0x8] sm:$0xff] }
  0x1e   :  { %200 = vmatpush.msra.mxu2 %v128_v33  ;;  %223 = vmatpush.msra.mxu3 %v65_v35  ;;  %v56_v48 = vld [vmem:[#allocation5 + $0x30] sm:$0xff]  ;;  %v54_v52 = vld [vmem:[#allocation5 + $0x20] sm:$0xff]  ;;  %v111_v1 = vld [vmem:[#allocation5 + $0x1e8] sm:$0xff] }
  0x1f   :  { %177 = vmatpush.msra.mxu1 %v96_v34  ;;  %155 = vmatpush.msra.mxu0 %v62_v36  ;;  %v120_v49 = vld [vmem:[#allocation5 + $0x230] sm:$0xff]  ;;  %v118_v53 = vld [vmem:[#allocation5 + $0x220] sm:$0xff]  ;;  %v145_v2 = vld [vmem:[#allocation5 + $0x2f8] sm:$0xff] }
  0x20   :  { %201 = vmatpush.msra.mxu2 %v126_v37  ;;  %224 = vmatpush.msra.mxu3 %v63_v39  ;;  %v88_v50 = vld [vmem:[#allocation5 + $0x130] sm:$0xff]  ;;  %v86_v54 = vld [vmem:[#allocation5 + $0x120] sm:$0xff]  ;;  %v109_v3 = vld [vmem:[#allocation5 + $0x1d8] sm:$0xff] }
  0x21   :  { %178 = vmatpush.msra.mxu1 %v94_v38  ;;  %156 = vmatpush.msra.mxu0 %v60_v40  ;;  %v52_v56 = vld [vmem:[#allocation5 + $0x10] sm:$0xff]  ;;  %v50_v60 = vld [vmem:[#allocation5] sm:$0xff]  ;;  %v143_v4 = vld [vmem:[#allocation5 + $0x2e8] sm:$0xff] }
  0x22   :  { %202 = vmatpush.msra.mxu2 %v124_v41  ;;  %225 = vmatpush.msra.mxu3 %v61_v43  ;;  %v116_v57 = vld [vmem:[#allocation5 + $0x210] sm:$0xff]  ;;  %v114_v61 = vld [vmem:[#allocation5 + $0x200] sm:$0xff]  ;;  %v107_v5 = vld [vmem:[#allocation5 + $0x1c8] sm:$0xff] }
  0x23   :  { %179 = vmatpush.msra.mxu1 %v92_v42  ;;  %157 = vmatpush.msra.mxu0 %v58_v44  ;;  %v84_v58 = vld [vmem:[#allocation5 + $0x110] sm:$0xff]  ;;  %v82_v63 = vld [vmem:[#allocation5 + $0x100] sm:$0xff]  ;;  %v141_v6 = vld [vmem:[#allocation5 + $0x2d8] sm:$0xff] }
  0x24   :  { %203 = vmatpush.msra.mxu2 %v122_v45  ;;  %226 = vmatpush.msra.mxu3 %v59_v47  ;;  %v105_v7 = vld [vmem:[#allocation5 + $0x1b8] sm:$0xff]  ;;  %v139_v8 = vld [vmem:[#allocation5 + $0x2c8] sm:$0xff]  ;;  %v494_v11 = vld [vmem:[#allocation2 + $0x10] sm:$0xff] }
  0x25   :  { %180 = vmatpush.msra.mxu1 %v90_v46  ;;  %158 = vmatpush.msra.mxu0 %v56_v48  ;;  %v103_v9 = vld [vmem:[#allocation5 + $0x1a8] sm:$0xff]  ;;  %v137_v10 = vld [vmem:[#allocation5 + $0x2b8] sm:$0xff]  ;;  %v44_v16 = vld [vmem:[#allocation2] sm:$0xff] }
  0x26   :  { %204 = vmatpush.msra.mxu2 %v120_v49  ;;  %227 = vmatpush.msra.mxu3 %v57_v51  ;;  %v101_v12 = vld [vmem:[#allocation5 + $0x198] sm:$0xff]  ;;  %v135_v13 = vld [vmem:[#allocation5 + $0x2a8] sm:$0xff]  ;;  %v48_v28 = vld [vmem:[#allocation2 + $0x20] sm:$0xff] }
  0x27   :  { %181 = vmatpush.msra.mxu1 %v88_v50  ;;  %159 = vmatpush.msra.mxu0 %v54_v52  ;;  %v99_v14 = vld [vmem:[#allocation5 + $0x188] sm:$0xff]  ;;  %v133_v15 = vld [vmem:[#allocation5 + $0x298] sm:$0xff] }
  0x28   :  { %205 = vmatpush.msra.mxu2 %v118_v53  ;;  %228 = vmatpush.msra.mxu3 %v55_v55  ;;  %v45_v17 = vld [vmem:[#allocation2 + $0x8] sm:$0xff]  ;;  %v131_v19 = vld [vmem:[#allocation5 + $0x288] sm:$0xff] }
  0x29   :  { %182 = vmatpush.msra.mxu1 %v86_v54  ;;  %160 = vmatpush.msra.mxu0 %v52_v56  ;;  %v97_v18 = vld [vmem:[#allocation5 + $0x178] sm:$0xff]  ;;  %v95_v20 = vld [vmem:[#allocation5 + $0x168] sm:$0xff] }
  0x2a   :  { %206 = vmatpush.msra.mxu2 %v116_v57  ;;  %229 = vmatpush.msra.mxu3 %v53_v59  ;;  %v129_v21 = vld [vmem:[#allocation5 + $0x278] sm:$0xff]  ;;  %v127_v24 = vld [vmem:[#allocation5 + $0x268] sm:$0xff] }
  0x2b   :  { %183 = vmatpush.msra.mxu1 %v84_v58  ;;  %161 = vmatpush.msra.mxu0 %v50_v60  ;;  %v49_v22 = vld [vmem:[#allocation2 + $0x28] sm:$0xff]  ;;  %v91_v25 = vld [vmem:[#allocation5 + $0x148] sm:$0xff] }
  0x2c   :  { %207 = vmatpush.msra.mxu2 %v114_v61  ;;  %230 = vmatpush.msra.mxu3 %v51_v0  ;;  %v93_v23 = vld [vmem:[#allocation5 + $0x158] sm:$0xff]  ;;  %v47_v27 = vld [vmem:[#allocation2 + $0x18] sm:$0xff] }
  0x2d   :  { %238 = vmatpush.msrb.mxu0 %v113_v62  ;;  %184 = vmatpush.msra.mxu1 %v82_v63  ;;  %v125_v26 = vld [vmem:[#allocation5 + $0x258] sm:$0xff]  ;;  %v123_v30 = vld [vmem:[#allocation5 + $0x248] sm:$0xff] }
  0x2e   :  { %342 = vmatpush.msrb.mxu2 %v113_v62  ;;  %358 = vmatpush.msrb.mxu3 %v145_v2  ;;  %v89_v29 = vld [vmem:[#allocation5 + $0x138] sm:$0xff]  ;;  %v87_v31 = vld [vmem:[#allocation5 + $0x128] sm:$0xff] }
  0x2f   :  { %239 = vmatpush.msrb.mxu0 %v111_v1  ;;  %261 = vmatpush.msrb.mxu1 %v145_v2  ;;  %v121_v32 = vld [vmem:[#allocation5 + $0x238] sm:$0xff]  ;;  %v119_v34 = vld [vmem:[#allocation5 + $0x228] sm:$0xff] }
  0x30   :  { %343 = vmatpush.msrb.mxu2 %v111_v1  ;;  %359 = vmatpush.msrb.mxu3 %v143_v4  ;;  %v85_v33 = vld [vmem:[#allocation5 + $0x118] sm:$0xff]  ;;  %v83_v35 = vld [vmem:[#allocation5 + $0x108] sm:$0xff] }
  0x31   :  { %240 = vmatpush.msrb.mxu0 %v109_v3  ;;  %262 = vmatpush.msrb.mxu1 %v143_v4  ;;  %v117_v36 = vld [vmem:[#allocation5 + $0x218] sm:$0xff]  ;;  %v115_v37 = vld [vmem:[#allocation5 + $0x208] sm:$0xff] }
  0x32   :  { %344 = vmatpush.msrb.mxu2 %v109_v3  ;;  %360 = vmatpush.msrb.mxu3 %v141_v6 }
  0x33   :  { %241 = vmatpush.msrb.mxu0 %v107_v5  ;;  %263 = vmatpush.msrb.mxu1 %v141_v6 }
  0x34   :  { %345 = vmatpush.msrb.mxu2 %v107_v5  ;;  %361 = vmatpush.msrb.mxu3 %v139_v8 }
  0x35   :  { %242 = vmatpush.msrb.mxu0 %v105_v7  ;;  %264 = vmatpush.msrb.mxu1 %v139_v8 }
  0x36   :  { %346 = vmatpush.msrb.mxu2 %v105_v7  ;;  %362 = vmatpush.msrb.mxu3 %v137_v10 }
  0x37   :  { %243 = vmatpush.msrb.mxu0 %v103_v9  ;;  %265 = vmatpush.msrb.mxu1 %v137_v10 }
  0x38   :  { %347 = vmatpush.msrb.mxu2 %v103_v9  ;;  %363 = vmatpush.msrb.mxu3 %v135_v13 }
  0x39   :  { %208 = vmatmul.f32.vlgmr.msra.gmra.mxu2 %v494_v11  ;;  %244 = vmatpush.msrb.mxu0 %v101_v12 }
  0x3a   :  { %348 = vmatpush.msrb.mxu2 %v101_v12  ;;  %266 = vmatpush.msrb.mxu1 %v135_v13 }
  0x3b   :  { %245 = vmatpush.msrb.mxu0 %v99_v14  ;;  %364 = vmatpush.msrb.mxu3 %v133_v15 }
  0x3c   :  { %349 = vmatpush.msrb.mxu2 %v99_v14  ;;  %267 = vmatpush.msrb.mxu1 %v133_v15 }
  0x3d   :  { %162 = vmatmul.f32.vlgmr.msra.gmra.mxu0 %v44_v16  ;;  %185 = vmatmul.f32.vlgmr.msra.gmra.mxu1 %v45_v17 }
  0x3e   :  { %246 = vmatpush.msrb.mxu0 %v97_v18  ;;  %350 = vmatpush.msrb.mxu2 %v97_v18 }
  0x3f   :  { %268 = vmatpush.msrb.mxu1 %v131_v19  ;;  %365 = vmatpush.msrb.mxu3 %v131_v19 }
  0x40   :  { %247 = vmatpush.msrb.mxu0 %v95_v20  ;;  %231 = vmatmul.f32.vlgmr.msra.gmra.mxu3 %v44_v16 }
  0x41   :  { %351 = vmatpush.msrb.mxu2 %v95_v20  ;;  %269 = vmatpush.msrb.mxu1 %v129_v21 }
  0x42   :  { %366 = vmatpush.msrb.mxu3 %v129_v21  ;;  %211 = vmatmul.f32.gmra.mxu2 %v49_v22 }
  0x43   :  { %248 = vmatpush.msrb.mxu0 %v93_v23  ;;  %352 = vmatpush.msrb.mxu2 %v93_v23 }
  0x44   :  { %270 = vmatpush.msrb.mxu1 %v127_v24  ;;  %367 = vmatpush.msrb.mxu3 %v127_v24 }
  0x45   :  { %249 = vmatpush.msrb.mxu0 %v91_v25  ;;  %353 = vmatpush.msrb.mxu2 %v91_v25 }
  0x46   :  { %271 = vmatpush.msrb.mxu1 %v125_v26  ;;  %368 = vmatpush.msrb.mxu3 %v125_v26 }
  0x47   :  { %165 = vmatmul.f32.gmra.mxu0 %v47_v27  ;;  %188 = vmatmul.f32.gmra.mxu1 %v48_v28 }
  0x48   :  { %250 = vmatpush.msrb.mxu0 %v89_v29  ;;  %354 = vmatpush.msrb.mxu2 %v89_v29 }
  0x49   :  { %272 = vmatpush.msrb.mxu1 %v123_v30  ;;  %369 = vmatpush.msrb.mxu3 %v123_v30 }
  0x4a   :  { %251 = vmatpush.msrb.mxu0 %v87_v31  ;;  %234 = vmatmul.f32.gmra.mxu3 %v47_v27 }
  0x4b   :  { %355 = vmatpush.msrb.mxu2 %v87_v31  ;;  %273 = vmatpush.msrb.mxu1 %v121_v32 }
  0x4c   :  { %370 = vmatpush.msrb.mxu3 %v121_v32  ;;  %252 = vmatpush.msrb.mxu0 %v85_v33 }
  0x4d   :  { %356 = vmatpush.msrb.mxu2 %v85_v33  ;;  %274 = vmatpush.msrb.mxu1 %v119_v34 }
  0x4e   :  { %371 = vmatpush.msrb.mxu3 %v119_v34  ;;  %253 = vmatpush.msrb.mxu0 %v83_v35 }
  0x4f   :  { %357 = vmatpush.msrb.mxu2 %v83_v35  ;;  %275 = vmatpush.msrb.mxu1 %v117_v36 }
  0x50   :  { %372 = vmatpush.msrb.mxu3 %v117_v36  ;;  %254 = vmatmul.f32.vlgmr.msrb.gmra.mxu0 %v45_v17 }
  0x51   :  { %257 = vmatmul.f32.vlgmr.msrb.gmra.mxu2 %v48_v28  ;;  %276 = vmatpush.msrb.mxu1 %v115_v37 }
  0x52   :  { %373 = vmatpush.msrb.mxu3 %v115_v37  ;;  %277 = vmatmul.f32.vlgmr.msrb.gmra.mxu1 %v494_v11 }
  0x53   :  { %280 = vmatmul.f32.vlgmr.msrb.gmra.mxu3 %v49_v22 }
  0xba   :  { %v163_v38 = vpop.f32.mrf.mxu0  ;;  %v186_v39 = vpop.f32.mrf.mxu1 }
  0xbb   :  { %v187_v44 = vadd.f32 %v186_v39, %v163_v38 }
  0xbc   :  { %v209_v40 = vpop.f32.mrf.mxu2 }
  0xbd   :  { %v210_v48 = vadd.f32 %v209_v40, %v187_v44 }
  0xbf   :  { %v284_v53 = vmul.f32 %v210_v48, %v210_v48 }
  0xc3   :  { %v232_v42 = vpop.f32.mrf.mxu3 }
  0xc4   :  { %v166_v41 = vpop.f32.mrf.mxu0  ;;  %v189_v43 = vpop.f32.mrf.mxu1 }
  0xc5   :  { %v212_v45 = vpop.f32.mrf.mxu2  ;;  %v190_v52 = vadd.f32 %v189_v43, %v166_v41 }
  0xc7   :  { %v213_v59 = vadd.f32 %v212_v45, %v190_v52 }
  0xc9   :  { %v286_v62 = vmul.f32 %v213_v59, %v213_v59 }
  0xcd   :  { %v235_v46 = vpop.f32.mrf.mxu3  ;;  %v255_v47 = vpop.f32.mrf.mxu0 }
  0xce   :  { %v256_v49 = vadd.f32 %v255_v47, %v232_v42 }
  0xcf   :  { %v278_v50 = vpop.f32.mrf.mxu1 }
  0xd0   :  { %v279_v51 = vadd.f32 %v278_v50, %v256_v49 }
  0xd2   :  { %v285_v54 = vmul.f32 %v279_v51, %v279_v51 }
  0xd4   :  { %v258_v55 = vpop.f32.mrf.mxu2  ;;  %v288_v57 = vadd.f32 %v285_v54, %v284_v53 }
  0xd5   :  { %v259_v56 = vadd.f32 %v258_v55, %v235_v46 }
  0xd6   :  { %v281_v58 = vpop.f32.mrf.mxu3  ;;  %289 = vadd.xlane.f32.xlu0 %v288_v57 }
  0xd7   :  { %v282_v60 = vadd.f32 %v281_v58, %v259_v56 }
  0xd9   :  { %v287_v61 = vmul.f32 %v282_v60, %v282_v60 }
  0xdb   :  { %v291_v63 = vadd.f32 %v287_v61, %v286_v62 }
  0xde   :  { %292 = vadd.xlane.f32.xlu0 %v291_v63 }
 0x149   :  { %v290_v0 = vpop.xlane.xlu0 %289 }
 0x14a   :  { %381 = vrsqrt.f32 %v290_v0  ;;  %vm300_vm1 = vweird.f32 %v290_v0 }
 0x150   :  { %v382_v1 = vpop.eup %381 }
 0x151   :  { %v295_v2 = vmul.f32 %v382_v1, %v290_v0  ;;  %v293_v3 = vpop.xlane.xlu0 %292  ;;  %vm301_vm0 = vweird.f32 %v382_v1 }
 0x152   :  { %383 = vrsqrt.f32 %v293_v3  ;;  %vm302_vm2 = vmor %vm300_vm1, %vm301_vm0  ;;  %vm310_vm4 = vweird.f32 %v293_v3 }
 0x153   :  { %v296_v4 = vmul.f32 %v382_v1, %v295_v2 }
 0x155   :  { %v297_v5 = vmul.f32 0.5, %v296_v4 }
 0x157   :  { %v298_v6 = vsub.f32 1.5, %v297_v5 }
 0x158   :  { %v384_v7 = vpop.eup %383 }
 0x159   :  { %v299_v8 = vmul.f32 %v382_v1, %v298_v6  ;;  %v305_v9 = vmul.f32 %v384_v7, %v293_v3  ;;  %vm311_vm3 = vweird.f32 %v384_v7 }
 0x15a   :  { %vm312_vm5 = vmor %vm310_vm4, %vm311_vm3 }
 0x15b   :  { %v303_v10 = vsel %vm302_vm2, %v382_v1, %v299_v8  ;;  %v306_v11 = vmul.f32 %v384_v7, %v305_v9 }
 0x15c   :  { %v314_v12 = vmul.f32 %v303_v10, %v210_v48  ;;  %v315_v13 = vmul.f32 %v303_v10, %v279_v51 }
 0x15d   :  { %v307_v14 = vmul.f32 0.5, %v306_v11 }
 0x15e   :  { %318 = vst [vmem:[#allocation7] sm:$0xff] %v314_v12 }
 0x15f   :  { %319 = vst [vmem:[#allocation7 + $0x8] sm:$0xff] %v315_v13  ;;  %v308_v15 = vsub.f32 1.5, %v307_v14 }
 0x161   :  { %v309_v16 = vmul.f32 %v384_v7, %v308_v15 }
 0x163   :  { %v313_v17 = vsel %vm312_vm5, %v384_v7, %v309_v16 }
 0x164   :  { %v316_v18 = vmul.f32 %v313_v17, %v213_v59  ;;  %v317_v19 = vmul.f32 %v313_v17, %v282_v60 }
 0x166   :  { %320 = vst [vmem:[#allocation7 + $0x10] sm:$0xff] %v316_v18 }
 0x167   :  { %321 = vst [vmem:[#allocation7 + $0x18] sm:$0xff] %v317_v19 }
 0x168   :  { %334 = dma.vmem_to_hbm [thread:$0]  %s327_s1, 512, %s329_s25, [#allocation4], %s467_s21, %s467_s21, %s468_s22  }
 0x169   :  { %461 = dma.done.wait [#allocation4], 512  }
 0x16a   :  { %462 = vsyncadd [#allocation4], 4294966784 }
 0x16b   :  { %339 = vsyncpa [#allocation3], 1 }
 0x16c   :  { %340 = vsyncpa [#allocation6], 1 }
 0x16d   :  { %341 = vsyncpa [#allocation4], 1 }

</bundles_post_ra>
